<compile_context>
chip_gen: v7x
topology: tpu7x:2x2x1
jax: 0.10.0
libtpu: 0.0.40
codegen_flags: <defaults>
</compile_context>

<pallas_src>
import jax
import jax.numpy as jnp
from jax.experimental import pallas as pl
from jax.experimental.pallas import tpu as pltpu


def _mlp_kernel(x_ref, w1_ref, b1_ref, w2_ref, b2_ref, o_ref):
    # x_ref:  (TB, in)      streamed, native layout
    # w1_ref: (in, hidden)  resident
    # b1_ref: (1, hidden)   resident
    # w2_ref: (hidden, out) resident
    # b2_ref: (1, out)      resident
    # o_ref:  (TB, out)
    x = x_ref[...]
    # fc1 on the MXU: (TB, in) @ (in, hidden) -> (TB, hidden), f32 accumulation.
    h = jnp.dot(x, w1_ref[...], preferred_element_type=jnp.float32)
    h = h + b1_ref[...]          # (1, hidden) broadcast over rows
    h = h * h                    # elementwise square (VPU)
    # fc2 on the MXU: (TB, hidden) @ (hidden, out) -> (TB, out).
    y = jnp.dot(h, w2_ref[...], preferred_element_type=jnp.float32)
    y = y + b2_ref[...]          # (1, out) broadcast
    o_ref[...] = y.astype(o_ref.dtype)


def _round_up(n, m):
    return ((n + m - 1) // m) * m


def _choose_batch_tile(B, block_b):
    # Lane-friendly tile (multiple of 128).  For large B keep >= 2 grid steps
    # so the "parallel" batch axis can be split across v7x's two TensorCores.
    tb = _round_up(max(pl.cdiv(B, 2), 1), 128)
    tb = min(tb, _round_up(block_b, 128))
    return max(tb, 128)


def neuralnet1_forward(x, w1, b1, w2, b2, *, block_b=16384):
    """x: (B, input_size); w1: (input_size, hidden); b1: (1, hidden);
    w2: (hidden, output); b2: (1, output). Returns (B, output)."""
    B, in_dim = x.shape
    hidden = w1.shape[1]
    out_dim = w2.shape[1]

    tb = _choose_batch_tile(B, block_b)
    grid = (pl.cdiv(B, tb),)          # ragged last block handled by Pallas masking

    itemsize = jnp.dtype(x.dtype).itemsize
    param_bytes = (in_dim * hidden + hidden + hidden * out_dim + out_dim) * 4
    cost = pl.CostEstimate(
        flops=2 * B * (in_dim * hidden + hidden * out_dim) + 3 * B * hidden,
        bytes_accessed=B * (in_dim + out_dim) * itemsize + param_bytes,
        transcendentals=0,
    )

    return pl.pallas_call(
        _mlp_kernel,
        out_shape=jax.ShapeDtypeStruct((B, out_dim), x.dtype),
        grid=grid,
        in_specs=[
            pl.BlockSpec((tb, in_dim), lambda i: (i, 0)),       # streamed x tile
            pl.BlockSpec((in_dim, hidden), lambda i: (0, 0)),   # resident params
            pl.BlockSpec((1, hidden), lambda i: (0, 0)),
            pl.BlockSpec((hidden, out_dim), lambda i: (0, 0)),
            pl.BlockSpec((1, out_dim), lambda i: (0, 0)),
        ],
        out_specs=pl.BlockSpec((tb, out_dim), lambda i: (i, 0)),
        compiler_params=pltpu.CompilerParams(
            dimension_semantics=("parallel",),
            vmem_limit_bytes=40 * 1024 * 1024,
        ),
        cost_estimate=cost,
    )(x, w1, b1, w2, b2)


def init_params(key, input_size=21, hidden=10, output=1, dtype=jnp.float32):
    """Deterministic init mimicking torch.nn.Linear's uniform(-1/sqrt(fan_in), 1/sqrt(fan_in))."""
    k1, k2, k3, k4 = jax.random.split(key, 4)
    bound1 = 1.0 / (input_size ** 0.5)
    bound2 = 1.0 / (hidden ** 0.5)
    # Stored as (in, out) so the math is x @ W (PyTorch stores (out, in) and does x @ W.T).
    w1 = jax.random.uniform(k1, (input_size, hidden), dtype, minval=-bound1, maxval=bound1)
    b1 = jax.random.uniform(k2, (1, hidden), dtype, minval=-bound1, maxval=bound1)
    w2 = jax.random.uniform(k3, (hidden, output), dtype, minval=-bound2, maxval=bound2)
    b2 = jax.random.uniform(k4, (1, output), dtype, minval=-bound2, maxval=bound2)
    return w1, b1, w2, b2


def _reference(x, w1, b1, w2, b2):
    h = x @ w1 + b1
    return (h * h) @ w2 + b2


if __name__ == "__main__":
    key = jax.random.PRNGKey(0)
    k_x, k_p, k_x2 = jax.random.split(key, 3)

    input_size, hidden, output = 21, 10, 1
    w1, b1, w2, b2 = init_params(k_p, input_size, hidden, output)

    # Small test (B=8): single ragged block (block > array rows, masked writeback).
    B = 8
    x = jax.random.normal(k_x, (B, input_size), dtype=jnp.float32)
    out = neuralnet1_forward(x, w1, b1, w2, b2)
    jax.block_until_ready(out)
    ref = _reference(x, w1, b1, w2, b2)
    assert out.shape == (B, output)
    assert jnp.allclose(out, ref, atol=1e-5, rtol=1e-5)

    # Multi-step grid + ragged last block (B=300 with 128-row tiles -> 3 steps).
    B2 = 300
    x2 = jax.random.normal(k_x2, (B2, input_size), dtype=jnp.float32)
    out2 = neuralnet1_forward(x2, w1, b1, w2, b2, block_b=128)
    jax.block_until_ready(out2)
    ref2 = _reference(x2, w1, b1, w2, b2)
    assert out2.shape == (B2, output)
    assert jnp.allclose(out2, ref2, atol=1e-5, rtol=1e-5)

    print("KERNEL_OK")
</pallas_src>

<mosaic_0001>
module attributes {stable_mosaic.version = 11 : i64} {
  func.func @_mlp_kernel(%arg0: i32, %arg1: memref<128x21xf32, #tpu.memory_space<vmem>>, %arg2: memref<21x10xf32, #tpu.memory_space<vmem>>, %arg3: memref<1x10xf32, #tpu.memory_space<vmem>>, %arg4: memref<10x1xf32, #tpu.memory_space<vmem>>, %arg5: memref<1x1xf32, #tpu.memory_space<vmem>>, %arg6: memref<128x1xf32, #tpu.memory_space<vmem>>) attributes {dimension_semantics = [#tpu.dimension_semantics<parallel>], iteration_bounds = array<i64: 1>, scalar_prefetch = 0 : i64, scratch_operands = 0 : i64, tpu.core_type = #tpu.core_type<tc>, window_params = [{transform_indices = @transform_0, window_bounds = array<i64: 128, 21>}, {pipeline_mode = #tpu.pipeline_mode<synchronous>, transform_indices = @transform_1, window_bounds = array<i64: 21, 10>}, {pipeline_mode = #tpu.pipeline_mode<synchronous>, transform_indices = @transform_2, window_bounds = array<i64: 1, 10>}, {pipeline_mode = #tpu.pipeline_mode<synchronous>, transform_indices = @transform_3, window_bounds = array<i64: 10, 1>}, {pipeline_mode = #tpu.pipeline_mode<synchronous>, transform_indices = @transform_4, window_bounds = array<i64: 1, 1>}, {transform_indices = @transform_5, window_bounds = array<i64: 128, 1>}]} {
    %c0 = arith.constant 0 : index
    %c0_0 = arith.constant 0 : index
    %0 = vector.load %arg1[%c0, %c0_0] : memref<128x21xf32, #tpu.memory_space<vmem>>, vector<128x21xf32>
    %c0_1 = arith.constant 0 : index
    %c0_2 = arith.constant 0 : index
    %1 = vector.load %arg2[%c0_1, %c0_2] : memref<21x10xf32, #tpu.memory_space<vmem>>, vector<21x10xf32>
    %cst = arith.constant dense<0.000000e+00> : vector<128x10xf32>
    %2 = tpu.matmul %0, %1, %cst {dimension_numbers = #tpu.dot_dimension_numbers<[1], [0], [0], [1], [0, 0, 1, 1], [], []>} : vector<128x21xf32>, vector<21x10xf32>, vector<128x10xf32> -> vector<128x10xf32>
    %c0_3 = arith.constant 0 : index
    %c0_4 = arith.constant 0 : index
    %3 = vector.load %arg3[%c0_3, %c0_4] : memref<1x10xf32, #tpu.memory_space<vmem>>, vector<1x10xf32>
    %4 = vector.broadcast %3 : vector<1x10xf32> to vector<128x10xf32>
    %5 = arith.addf %2, %4 : vector<128x10xf32>
    %6 = arith.mulf %5, %5 : vector<128x10xf32>
    %c0_5 = arith.constant 0 : index
    %c0_6 = arith.constant 0 : index
    %7 = vector.load %arg4[%c0_5, %c0_6] : memref<10x1xf32, #tpu.memory_space<vmem>>, vector<10x1xf32>
    %cst_7 = arith.constant dense<0.000000e+00> : vector<128x1xf32>
    %8 = tpu.matmul %6, %7, %cst_7 {dimension_numbers = #tpu.dot_dimension_numbers<[1], [0], [0], [1], [0, 0, 1, 1], [], []>} : vector<128x10xf32>, vector<10x1xf32>, vector<128x1xf32> -> vector<128x1xf32>
    %c0_8 = arith.constant 0 : index
    %c0_9 = arith.constant 0 : index
    %9 = vector.load %arg5[%c0_8, %c0_9] : memref<1x1xf32, #tpu.memory_space<vmem>>, vector<1x1xf32>
    %10 = vector.broadcast %9 : vector<1x1xf32> to vector<128x1xf32>
    %11 = arith.addf %8, %10 : vector<128x1xf32>
    %c0_10 = arith.constant 0 : index
    %c0_11 = arith.constant 0 : index
    %12 = vector.load %arg6[%c0_10, %c0_11] : memref<128x1xf32, #tpu.memory_space<vmem>>, vector<128x1xf32>
    tpu.vector_store %arg6[%c0_10, %c0_11], %11 {strides = array<i32>} : memref<128x1xf32, #tpu.memory_space<vmem>>, vector<128x1xf32>,
    return
  }
  func.func @transform_0(%arg0: i32) -> (i32, i32) {
    %c0_i32 = arith.constant 0 : i32
    %c0_i32_0 = arith.constant 0 : i32
    return %arg0, %c0_i32 : i32, i32
  }
  func.func @transform_1(%arg0: i32) -> (i32, i32) {
    %c0_i32 = arith.constant 0 : i32
    %c0_i32_0 = arith.constant 0 : i32
    %c0_i32_1 = arith.constant 0 : i32
    return %c0_i32, %c0_i32_0 : i32, i32
  }
  func.func @transform_2(%arg0: i32) -> (i32, i32) {
    %c0_i32 = arith.constant 0 : i32
    %c0_i32_0 = arith.constant 0 : i32
    %c0_i32_1 = arith.constant 0 : i32
    return %c0_i32, %c0_i32_0 : i32, i32
  }
  func.func @transform_3(%arg0: i32) -> (i32, i32) {
    %c0_i32 = arith.constant 0 : i32
    %c0_i32_0 = arith.constant 0 : i32
    %c0_i32_1 = arith.constant 0 : i32
    return %c0_i32, %c0_i32_0 : i32, i32
  }
  func.func @transform_4(%arg0: i32) -> (i32, i32) {
    %c0_i32 = arith.constant 0 : i32
    %c0_i32_0 = arith.constant 0 : i32
    %c0_i32_1 = arith.constant 0 : i32
    return %c0_i32, %c0_i32_0 : i32, i32
  }
  func.func @transform_5(%arg0: i32) -> (i32, i32) {
    %c0_i32 = arith.constant 0 : i32
    %c0_i32_0 = arith.constant 0 : i32
    return %arg0, %c0_i32 : i32, i32
  }
}

</mosaic_0001>

<bundles_post_ra>
// kernel: tpu_custom_call.1
= control target key start
LH: loop header
LB: loop body
LE: loop exit
PB: predicated region body
PF: predicated region fallthrough
CT: control target
= control target key end

     0   :  { %s803_s0 = inlined_call_operand.vmem [shape: f32[8,21], index: 0, kind: input, shape index: {}]   ;;  %s804_s1 = inlined_call_operand.vmem [shape: f32[21,10], index: 1, kind: input, shape index: {}]   ;;  %s805_s2 = inlined_call_operand.vmem [shape: f32[1,10], index: 2, kind: input, shape index: {}]   ;;  %s806_s3 = inlined_call_operand.vmem [shape: f32[10,1], index: 3, kind: input, shape index: {}]   ;;  %s807_s4 = inlined_call_operand.<no memory space> [shape: f32[1,1], index: 4, kind: input, shape index: {}]   ;;  %s808_s5 = inlined_call_operand.vmem [shape: f32[8,1], index: 5, kind: output, shape index: {}]  }
   0x1   :  { %v10_v0 = vstv %s807_s4 }
   0x2   :  { %11 = vst [vmem:[#allocation2] sm:$0x1] %v10_v0 }
   0x3   :  { %v38_v1 = vld [vmem:[%s804_s1] sm:$0xff]  ;;  %v39_v2 = vld [vmem:[%s804_s1 + $0x8] sm:$0xff]  ;;  %vm48_vm0 = vcmask 171008   ;;  %v40_v5 = vld [vmem:[%s804_s1 + $0x10] sm:$0x1f]  ;;  %vm97_vm1 = vcmask 1044480  }
   0x4   :  { %v657_v3 = vpack.c.bf16 %v39_v2, %v38_v1  ;;  %v22_v4 = vld [vmem:[%s803_s0] sm:$0xff]  ;;  %v23_v6 = vld [vmem:[%s803_s0 + $0x8] sm:$0xff]  ;;  %v24_v7 = vld [vmem:[%s803_s0 + $0x10] sm:$0xff]  ;;  %vm320_vm2 = vcmask 1041408   ;;  %vm668_vm3 = vmmov 1   ;;  %vm271_vm5 = vcmask 80896  }
   0x5   :  { %605 = vmatprep.mubr.msk.f32.mxu0 %vm48_vm0, %v22_v4  ;;  %v25_v8 = vld [vmem:[%s803_s0 + $0x18] sm:$0xff]  ;;  %v26_v9 = vld [vmem:[%s803_s0 + $0x20] sm:$0xff]  ;;  %v27_v10 = vld [vmem:[%s803_s0 + $0x28] sm:$0xff]  ;;  %vm469_vm6 = vcmask 7168  }
   0x6   :  { %658 = vmatprep.subr.bf16.mxu0 %v657_v3  ;;  %v28_v11 = vld [vmem:[%s803_s0 + $0x30] sm:$0xff]  ;;  %v29_v12 = vld [vmem:[%s803_s0 + $0x38] sm:$0xff]  ;;  %v30_v13 = vld [vmem:[%s803_s0 + $0x40] sm:$0xff] }
   0x7   :  { %660 = vmatpush3.bf16.msra.mxu0 %v657_v3  ;;  %v31_v14 = vld [vmem:[%s803_s0 + $0x48] sm:$0xff]  ;;  %v32_v15 = vld [vmem:[%s803_s0 + $0x50] sm:$0xff]  ;;  %v33_v16 = vld [vmem:[%s803_s0 + $0x58] sm:$0xff] }
   0x8   :  { %603 = vmatprep.subr.msk.mxu0 %vm97_vm1, %v40_v5  ;;  %v34_v17 = vld [vmem:[%s803_s0 + $0x60] sm:$0xff]  ;;  %v35_v18 = vld [vmem:[%s803_s0 + $0x68] sm:$0xff]  ;;  %v36_v19 = vld [vmem:[%s803_s0 + $0x70] sm:$0xff] }
   0x9   :  { %v37_v20 = vld [vmem:[%s803_s0 + $0x78] sm:$0xff]  ;;  %v262_v21 = vld [vmem:[%s806_s3] sm:$0xff]  ;;  %v263_v22 = vld [vmem:[%s806_s3 + $0x8] sm:$0x3] }
   0xa   :  { %v661_v23 = vpack.c.bf16 %v263_v22, %v262_v21  ;;  %vm662_vm4 = vmpackc.low %vm320_vm2, %vm668_vm3  ;;  %v526_v24 = vld [vmem:[%s805_s2] ss:$0 sm:$0xff] }
   0xb   :  { %604 = vmatpush3.msk.msra.mxu0 %vm97_vm1, %v40_v5 }
   0xc   :  { %606 = vmatmul.mubr.msk.f32.vlgmr.msra.gmra.mrb[0].mxu0 %vm48_vm0, %v23_v6  ;;  %663 = vmatprep.subr.msk.bf16.mxu1 %vm662_vm4, %v661_v23 }
   0xd   :  { %608 = vmatprep.mubr.msk.f32.mxu0 %vm48_vm0, %v24_v7  ;;  %666 = vmatpush3.bf16.msk.msra.mxu1 %vm662_vm4, %v661_v23 }
  0x10   :  { %609 = vmatmul.mubr.msk.f32.gmra.mrb[2].mxu0 %vm48_vm0, %v25_v8 }
  0x11   :  { %611 = vmatprep.mubr.msk.f32.mxu0 %vm48_vm0, %v26_v9  ;;  %v544_v9 = vld [vmem:[#allocation2] ss:$0 sm:$0xff] }
  0x14   :  { %612 = vmatmul.mubr.msk.f32.gmra.mrb[4].mxu0 %vm48_vm0, %v27_v10 }
  0x15   :  { %614 = vmatprep.mubr.msk.f32.mxu0 %vm48_vm0, %v28_v11 }
  0x18   :  { %615 = vmatmul.mubr.msk.f32.gmra.mrb[6].mxu0 %vm48_vm0, %v29_v12 }
  0x19   :  { %617 = vmatprep.mubr.msk.f32.mxu0 %vm48_vm0, %v30_v13 }
  0x1c   :  { %618 = vmatmul.mubr.msk.f32.gmra.mrb[8].mxu0 %vm48_vm0, %v31_v14 }
  0x1d   :  { %620 = vmatprep.mubr.msk.f32.mxu0 %vm48_vm0, %v32_v15 }
  0x20   :  { %621 = vmatmul.mubr.msk.f32.gmra.mrb[10].mxu0 %vm48_vm0, %v33_v16 }
  0x21   :  { %623 = vmatprep.mubr.msk.f32.mxu0 %vm48_vm0, %v34_v17 }
  0x24   :  { %624 = vmatmul.mubr.msk.f32.gmra.mrb[12].mxu0 %vm48_vm0, %v35_v18 }
  0x25   :  { %626 = vmatprep.mubr.msk.f32.mxu0 %vm48_vm0, %v36_v19 }
  0x28   :  { %627 = vmatmul.mubr.msk.f32.gmra.mrb[14].mxu0 %vm48_vm0, %v37_v20 }
  0xdf   :  { %v607_v25 = vpop.f32.mrb[0].mxu0 }
  0xe0   :  { %v173_v26 = vadd.f32 %v607_v25, %v526_v24  ;;  %v167_v27 = vpop.f32.mrb[1].mxu0 }
  0xe1   :  { %v168_v28 = vadd.f32 %v526_v24, %v167_v27 }
  0xe2   :  { %v247_v31 = vmul.f32 %v173_v26, %v173_v26 }
  0xe3   :  { %v246_v29 = vmul.f32 %v168_v28, %v168_v28  ;;  %v610_v30 = vpop.f32.mrb[2].mxu0 }
  0xe4   :  { %v183_v32 = vadd.f32 %v610_v30, %v526_v24  ;;  %v177_v33 = vpop.f32.mrb[3].mxu0 }
  0xe5   :  { %v178_v34 = vadd.f32 %v526_v24, %v177_v33  ;;  %633 = vmatprep.mubr.msk.f32.mxu1 %vm271_vm5, %v246_v29 }
  0xe6   :  { %634 = vmatmul.mubr.msk.f32.vlgmr.msra.gmra.mrb[0].mxu1 %vm271_vm5, %v247_v31  ;;  %v249_v37 = vmul.f32 %v183_v32, %v183_v32 }
  0xe7   :  { %v248_v35 = vmul.f32 %v178_v34, %v178_v34  ;;  %v613_v36 = vpop.f32.mrb[4].mxu0 }
  0xe8   :  { %v193_v38 = vadd.f32 %v613_v36, %v526_v24  ;;  %v187_v39 = vpop.f32.mrb[5].mxu0 }
  0xe9   :  { %v188_v40 = vadd.f32 %v526_v24, %v187_v39  ;;  %636 = vmatprep.mubr.msk.f32.mxu1 %vm271_vm5, %v248_v35 }
  0xea   :  { %637 = vmatmul.mubr.msk.f32.gmra.mrb[2].mxu1 %vm271_vm5, %v249_v37  ;;  %v251_v43 = vmul.f32 %v193_v38, %v193_v38 }
  0xeb   :  { %v250_v41 = vmul.f32 %v188_v40, %v188_v40  ;;  %v616_v42 = vpop.f32.mrb[6].mxu0 }
  0xec   :  { %v203_v44 = vadd.f32 %v616_v42, %v526_v24  ;;  %v197_v45 = vpop.f32.mrb[7].mxu0 }
  0xed   :  { %v198_v46 = vadd.f32 %v526_v24, %v197_v45  ;;  %639 = vmatprep.mubr.msk.f32.mxu1 %vm271_vm5, %v250_v41 }
  0xee   :  { %640 = vmatmul.mubr.msk.f32.gmra.mrb[4].mxu1 %vm271_vm5, %v251_v43  ;;  %v253_v49 = vmul.f32 %v203_v44, %v203_v44 }
  0xef   :  { %v252_v47 = vmul.f32 %v198_v46, %v198_v46  ;;  %v619_v48 = vpop.f32.mrb[8].mxu0 }
  0xf0   :  { %v213_v50 = vadd.f32 %v619_v48, %v526_v24  ;;  %v207_v51 = vpop.f32.mrb[9].mxu0 }
  0xf1   :  { %v208_v52 = vadd.f32 %v526_v24, %v207_v51  ;;  %642 = vmatprep.mubr.msk.f32.mxu1 %vm271_vm5, %v252_v47 }
  0xf2   :  { %643 = vmatmul.mubr.msk.f32.gmra.mrb[6].mxu1 %vm271_vm5, %v253_v49  ;;  %v255_v55 = vmul.f32 %v213_v50, %v213_v50 }
  0xf3   :  { %v254_v53 = vmul.f32 %v208_v52, %v208_v52  ;;  %v622_v54 = vpop.f32.mrb[10].mxu0 }
  0xf4   :  { %v223_v56 = vadd.f32 %v622_v54, %v526_v24  ;;  %v217_v57 = vpop.f32.mrb[11].mxu0 }
  0xf5   :  { %v218_v58 = vadd.f32 %v526_v24, %v217_v57  ;;  %645 = vmatprep.mubr.msk.f32.mxu1 %vm271_vm5, %v254_v53 }
  0xf6   :  { %646 = vmatmul.mubr.msk.f32.gmra.mrb[8].mxu1 %vm271_vm5, %v255_v55  ;;  %v257_v61 = vmul.f32 %v223_v56, %v223_v56 }
  0xf7   :  { %v256_v59 = vmul.f32 %v218_v58, %v218_v58  ;;  %v625_v60 = vpop.f32.mrb[12].mxu0 }
  0xf8   :  { %v233_v62 = vadd.f32 %v625_v60, %v526_v24  ;;  %v227_v63 = vpop.f32.mrb[13].mxu0 }
  0xf9   :  { %v228_v0 = vadd.f32 %v526_v24, %v227_v63  ;;  %648 = vmatprep.mubr.msk.f32.mxu1 %vm271_vm5, %v256_v59 }
  0xfa   :  { %649 = vmatmul.mubr.msk.f32.gmra.mrb[10].mxu1 %vm271_vm5, %v257_v61  ;;  %v259_v3 = vmul.f32 %v233_v62, %v233_v62 }
  0xfb   :  { %v258_v1 = vmul.f32 %v228_v0, %v228_v0  ;;  %v628_v2 = vpop.f32.mrb[14].mxu0 }
  0xfc   :  { %v243_v4 = vadd.f32 %v628_v2, %v526_v24  ;;  %v237_v5 = vpop.f32.mrb[15].mxu0 }
  0xfd   :  { %v238_v6 = vadd.f32 %v526_v24, %v237_v5  ;;  %651 = vmatprep.mubr.msk.f32.mxu1 %vm271_vm5, %v258_v1 }
  0xfe   :  { %652 = vmatmul.mubr.msk.f32.gmra.mrb[12].mxu1 %vm271_vm5, %v259_v3  ;;  %v261_v8 = vmul.f32 %v243_v4, %v243_v4 }
  0xff   :  { %v260_v7 = vmul.f32 %v238_v6, %v238_v6 }
 0x101   :  { %654 = vmatprep.mubr.msk.f32.mxu1 %vm271_vm5, %v260_v7 }
 0x102   :  { %655 = vmatmul.mubr.msk.f32.gmra.mrb[14].mxu1 %vm271_vm5, %v261_v8 }
 0x1b9   :  { %v635_v10 = vpop.f32.mrb[0].mxu1 }
 0x1ba   :  { %v390_v11 = vpop.f32.mrb[1].mxu1 }
 0x1bb   :  { %v391_v12 = vadd.f32 %v544_v9, %v390_v11 }
 0x1bd   :  { %470 = vst.msk [vmem:[#allocation3] sm:$0xff] %vm469_vm6, %v391_v12  ;;  %v638_v13 = vpop.f32.mrb[2].mxu1 }
 0x1be   :  { %v400_v14 = vpop.f32.mrb[3].mxu1 }
 0x1c1   :  { %v641_v15 = vpop.f32.mrb[4].mxu1 }
 0x1c2   :  { %v410_v16 = vpop.f32.mrb[5].mxu1 }
 0x1c4   :  { %v515_v17 = vld [vmem:[#allocation3] sm:$0xff] }
 0x1c5   :  { %516 = vst [vmem:[%s808_s5] sm:$0xff] %v515_v17  ;;  %v644_v18 = vpop.f32.mrb[6].mxu1 }
 0x1c6   :  { %v420_v19 = vpop.f32.mrb[7].mxu1 }
 0x1c9   :  { %v647_v20 = vpop.f32.mrb[8].mxu1 }
 0x1ca   :  { %v430_v21 = vpop.f32.mrb[9].mxu1 }
 0x1cd   :  { %v650_v22 = vpop.f32.mrb[10].mxu1 }
 0x1ce   :  { %v440_v23 = vpop.f32.mrb[11].mxu1 }
 0x1d1   :  { %v653_v24 = vpop.f32.mrb[12].mxu1 }
 0x1d2   :  { %v450_v25 = vpop.f32.mrb[13].mxu1 }
 0x1d5   :  { %v656_v26 = vpop.f32.mrb[14].mxu1 }
 0x1d6   :  { %v460_v27 = vpop.f32.mrb[15].mxu1 }

</bundles_post_ra>
